<compile_context>
chip_gen: v7x
topology: tpu7x:2x2x1
jax: 0.10.0
libtpu: 0.0.40
codegen_flags: <defaults>
</compile_context>

<pallas_src>
import functools

import jax
import jax.numpy as jnp
from jax.experimental import pallas as pl
from jax.experimental.pallas import tpu as pltpu


def _round_up(a, b):
    return (a + b - 1) // b * b


def _cdiv(a, b):
    return -(-a // b)


def _vmem_capacity_bytes():
    """Physical VMEM per core; conservative fallback if query unavailable."""
    try:
        info = pltpu.get_tpu_info()
        for attr in ("vmem_capacity_bytes", "vmem_size_bytes", "vmem_bytes"):
            v = getattr(info, attr, None)
            if v:
                return int(v)
    except Exception:
        pass
    return 64 * 1024 * 1024   # v7x per-TC VMEM (smallest generation)


# --------------------------------------------------------------------------- #
# Kernels
# --------------------------------------------------------------------------- #

def _resident_expert_mlp_kernel(*refs, layer_num, skips, coded_slots, use_latent):
    """All layers for one (expert, token tile); weights resident in VMEM.

    refs (use_latent): x, latents, W_main(L,1,Hpad,Hpad), W_lat(nc,1,Latpad,Hpad),
                       B(L,1,1,Hpad), out
    refs (no latent) : x, W_main, B, out
    """
    if use_latent:
        x_ref, lat_ref, w_ref, wlat_ref, b_ref, o_ref = refs
    else:
        x_ref, w_ref, b_ref, o_ref = refs
        lat_ref = wlat_ref = None

    x0 = x_ref[0]                                # (tm, Hpad) f32
    x_res = x0                                   # residual, f32
    h = x0.astype(jnp.bfloat16)                  # bf16 MXU LHS
    if use_latent:
        lat = lat_ref[0].astype(jnp.bfloat16)    # (tm, Latpad) bf16, reused

    acc = None
    for lid in range(layer_num):
        # bf16 x bf16 MXU matmul, f32 accumulation.
        acc = jnp.dot(h, w_ref[lid, 0], preferred_element_type=jnp.float32)
        if use_latent and lid in coded_slots:
            # Latent contraction only on coded layers (no wasted zero-row math).
            acc = acc + jnp.dot(lat, wlat_ref[coded_slots[lid], 0],
                                preferred_element_type=jnp.float32)
        acc = acc + b_ref[lid, 0]                # f32 bias
        is_skip = lid in skips
        if is_skip:
            acc = acc + x_res                    # f32 residual add (static)
        if lid < layer_num - 1:                  # torch: no activation on last layer
            h_act = jnp.maximum(acc, 0.0)
            h = h_act.astype(jnp.bfloat16)
            if is_skip:
                x_res = h_act                    # x = h after activation

    o_ref[0] = acc.astype(o_ref.dtype)           # single HBM writeback per tile


def _streaming_expert_mlp_kernel(*refs, layer_num, skips, hpad, dpad, use_latent):
    """One layer per grid step (layer axis innermost); weights streamed.

    Scratch: h_sc bf16 (tm, Dpad) = [activation | latent tail],
             x_sc f32 (tm, Hpad) residual, acc_sc f32 (tm, Hpad).
    """
    if use_latent:
        x_ref, lat_ref, w_ref, b_ref, o_ref, h_sc, x_sc, acc_sc = refs
    else:
        x_ref, w_ref, b_ref, o_ref, h_sc, x_sc, acc_sc = refs
        lat_ref = None

    l = pl.program_id(2)

    @pl.when(l == 0)
    def _init():
        x0 = x_ref[0]                                        # (tm, Hpad) f32
        h_sc[:, 0:hpad] = x0.astype(jnp.bfloat16)
        if use_latent:
            h_sc[:, hpad:dpad] = lat_ref[0].astype(jnp.bfloat16)
        x_sc[...] = x0

    # bf16 x bf16 MXU matmul, f32 accumulation; bias from the per-expert stack.
    acc_sc[...] = jnp.dot(h_sc[...], w_ref[0, 0],
                          preferred_element_type=jnp.float32) + b_ref[l, 0]

    skips = tuple(skips)
    if skips:
        is_skip = (l == skips[0])
        for s in skips[1:]:
            is_skip = jnp.logical_or(is_skip, l == s)

        @pl.when(is_skip)
        def _skip_add():                                     # only on skip layers
            acc_sc[...] = acc_sc[...] + x_sc[...]

    @pl.when(l == layer_num - 1)
    def _write_out():                                        # single output store
        o_ref[0] = acc_sc[...].astype(o_ref.dtype)

    @pl.when(l < layer_num - 1)
    def _carry():                                            # bf16 carry for next layer
        h_sc[:, 0:hpad] = jnp.maximum(acc_sc[...], 0.0).astype(jnp.bfloat16)

    if skips:
        @pl.when(jnp.logical_and(is_skip, l < layer_num - 1))
        def _update_residual():
            x_sc[...] = jnp.maximum(acc_sc[...], 0.0)


# --------------------------------------------------------------------------- #
# Planning / packing (hoisted out of the per-call forward path)
# --------------------------------------------------------------------------- #

def _make_plan(*, model_dim, latent_dim, skips, layer_num, local_experts,
               force_streaming=False):
    if latent_dim != 0 and skips is None:
        raise ValueError("latent_dim != 0 requires an explicit skips list "
                         "(the reference torch module cannot be constructed "
                         "with skips=None either).")
    skips_list = sorted(set(int(s) for s in skips)) if skips is not None else []
    use_latent = latent_dim != 0
    coded = sorted(set([0] + skips_list)) if use_latent else []

    Hpad = _round_up(model_dim, 128)
    Latpad = _round_up(latent_dim, 128) if use_latent else 0
    Dpad = Hpad + Latpad
    L, E = layer_num, local_experts

    vmem_cap = _vmem_capacity_bytes()
    vmem_limit = max(32 * 1024 * 1024, vmem_cap * 3 // 4)
    budget = vmem_limit - 8 * 1024 * 1024        # headroom for compiler scratch

    # RESIDENT: full per-expert weight/bias stack (x2: Pallas double-buffers).
    resident_fixed = 2 * L * Hpad * Hpad * 2 + 2 * L * Hpad * 4
    if use_latent:
        resident_fixed += 2 * len(coded) * Latpad * Hpad * 2
    resident_per_tok = (4 * Hpad * 4                       # x + out double buffers
                        + (2 * Latpad * 4 if use_latent else 0)
                        + 4 * Hpad * 4 + Hpad * 2 + Latpad * 2)  # live values/spill

    resident = (not force_streaming) and \
               (resident_fixed + 8 * resident_per_tok <= budget)

    if resident:
        fixed, per_tok = resident_fixed, resident_per_tok
    else:
        # STREAMING: one (Dpad, Hpad) weight block double-buffered + resident
        # bias stack + activation/residual/acc scratch.
        fixed = 2 * Dpad * Hpad * 2 + 2 * L * Hpad * 4
        per_tok = (4 * Hpad * 4 + (2 * Latpad * 4 if use_latent else 0)
                   + Dpad * 2 + 2 * Hpad * 4 + 2 * Hpad * 4)

    return dict(model_dim=model_dim, latent_dim=latent_dim, use_latent=use_latent,
                skips=skips_list, coded=coded, L=L, E=E,
                Hpad=Hpad, Latpad=Latpad, Dpad=Dpad,
                resident=resident, fixed=fixed, per_tok=per_tok,
                budget=budget, vmem_limit=int(vmem_limit))


def _choose_tiles(T, plan):
    T8 = _round_up(max(int(T), 1), 8)
    tm = _round_up(min(T8, 1024), 8)
    while tm > 8 and plan["fixed"] + tm * plan["per_tok"] > plan["budget"]:
        tm = _round_up(tm // 2, 8)
    # Megacore (v7x has 2 TCs): keep >= 2 parallel grid points when possible.
    if plan["E"] == 1 and T8 > 8 and _cdiv(T8, tm) < 2:
        tm = _round_up(_cdiv(T8, 2), 8)
    Tpad = _round_up(T8, tm)
    return tm, Tpad, Tpad // tm


def _pack_params(weights, biases, plan):
    """Pad, cast to bf16 and stack weights/biases once (cached by the caller)."""
    model_dim, latent_dim = plan["model_dim"], plan["latent_dim"]
    use_latent, coded = plan["use_latent"], plan["coded"]
    Hpad, Latpad, Dpad = plan["Hpad"], plan["Latpad"], plan["Dpad"]
    L, E = plan["L"], plan["E"]

    B = jnp.zeros((L, E, 1, Hpad), jnp.float32)
    for lid in range(L):
        b = jnp.asarray(biases[lid], jnp.float32).reshape(E, 1, model_dim)
        B = B.at[lid, :, :, :model_dim].set(b)

    if plan["resident"]:
        Wm = jnp.zeros((L, E, Hpad, Hpad), jnp.bfloat16)
        for lid in range(L):
            w = jnp.asarray(weights[lid], jnp.float32)
            Wm = Wm.at[lid, :, :model_dim, :model_dim].set(
                w[:, :model_dim, :].astype(jnp.bfloat16))
        Wl = None
        if use_latent:
            Wl = jnp.zeros((len(coded), E, Latpad, Hpad), jnp.bfloat16)
            for slot, lid in enumerate(coded):
                w = jnp.asarray(weights[lid], jnp.float32)
                Wl = Wl.at[slot, :, :latent_dim, :model_dim].set(
                    w[:, model_dim:, :].astype(jnp.bfloat16))
        return (Wm, Wl, B)

    # Streaming layout: combined (L, E, Dpad, Hpad) slab; latent rows of coded
    # layers in the [Hpad:Hpad+latent_dim] band, zero elsewhere (exact padding).
    W = jnp.zeros((L, E, Dpad, Hpad), jnp.bfloat16)
    for lid in range(L):
        w = jnp.asarray(weights[lid], jnp.float32).astype(jnp.bfloat16)
        if use_latent and lid in coded:
            W = W.at[lid, :, :model_dim, :model_dim].set(w[:, :model_dim, :])
            W = W.at[lid, :, Hpad:Hpad + latent_dim, :model_dim].set(w[:, model_dim:, :])
        else:
            W = W.at[lid, :, :model_dim, :model_dim].set(w)
    return (W, B)


# --------------------------------------------------------------------------- #
# Forward
# --------------------------------------------------------------------------- #

def _expert_mlp_forward(x, packed, plan):
    model_dim, latent_dim = plan["model_dim"], plan["latent_dim"]
    use_latent = plan["use_latent"]
    Hpad, Latpad, Dpad = plan["Hpad"], plan["Latpad"], plan["Dpad"]
    L, E = plan["L"], plan["E"]

    x = jnp.squeeze(x, 0)                                    # (E, T, coded_dim)
    assert x.shape[0] == E
    T = x.shape[1]
    if latent_dim != 0:
        latents = x[..., model_dim:model_dim + latent_dim]
        x = x[..., :model_dim]

    tm, Tpad, nt = _choose_tiles(T, plan)

    xp = jnp.zeros((E, Tpad, Hpad), jnp.float32)
    xp = xp.at[:, :T, :model_dim].set(x.astype(jnp.float32))
    if use_latent:
        latp = jnp.zeros((E, Tpad, Latpad), jnp.float32)
        latp = latp.at[:, :T, :latent_dim].set(latents.astype(jnp.float32))

    if plan["resident"]:
        Wm, Wl, B = packed
        coded = plan["coded"]
        coded_slots = {lid: i for i, lid in enumerate(coded)}

        inputs = [xp]
        in_specs = [pl.BlockSpec((1, tm, Hpad), lambda e, t: (e, t, 0))]
        if use_latent:
            inputs.append(latp)
            in_specs.append(pl.BlockSpec((1, tm, Latpad), lambda e, t: (e, t, 0)))
        inputs.append(Wm)
        in_specs.append(pl.BlockSpec((L, 1, Hpad, Hpad), lambda e, t: (0, e, 0, 0)))
        if use_latent:
            inputs.append(Wl)
            in_specs.append(pl.BlockSpec((len(coded), 1, Latpad, Hpad),
                                         lambda e, t: (0, e, 0, 0)))
        inputs.append(B)
        in_specs.append(pl.BlockSpec((L, 1, 1, Hpad), lambda e, t: (0, e, 0, 0)))

        kernel = functools.partial(
            _resident_expert_mlp_kernel, layer_num=L,
            skips=frozenset(plan["skips"]), coded_slots=coded_slots,
            use_latent=use_latent)

        flops = 2 * E * Tpad * L * Hpad * Hpad
        if use_latent:
            flops += 2 * E * Tpad * len(coded) * Latpad * Hpad
        bytes_accessed = (Wm.size * 2 + (Wl.size * 2 if use_latent else 0)
                          + B.size * 4 + xp.size * 4
                          + (latp.size * 4 if use_latent else 0)
                          + E * Tpad * Hpad * 4)

        out = pl.pallas_call(
            kernel,
            out_shape=jax.ShapeDtypeStruct((E, Tpad, Hpad), jnp.float32),
            grid_spec=pltpu.PrefetchScalarGridSpec(
                num_scalar_prefetch=0, grid=(E, nt),
                in_specs=in_specs,
                out_specs=pl.BlockSpec((1, tm, Hpad), lambda e, t: (e, t, 0)),
            ),
            compiler_params=pltpu.CompilerParams(
                dimension_semantics=("parallel", "parallel"),
                vmem_limit_bytes=plan["vmem_limit"]),
            cost_estimate=pl.CostEstimate(flops=int(flops), transcendentals=0,
                                          bytes_accessed=int(bytes_accessed)),
        )(*inputs)
    else:
        W, B = packed
        inputs = [xp]
        in_specs = [pl.BlockSpec((1, tm, Hpad), lambda e, t, l: (e, t, 0))]
        if use_latent:
            inputs.append(latp)
            in_specs.append(pl.BlockSpec((1, tm, Latpad), lambda e, t, l: (e, t, 0)))
        inputs.append(W)
        in_specs.append(pl.BlockSpec((1, 1, Dpad, Hpad), lambda e, t, l: (l, e, 0, 0)))
        inputs.append(B)
        in_specs.append(pl.BlockSpec((L, 1, 1, Hpad), lambda e, t, l: (0, e, 0, 0)))

        kernel = functools.partial(
            _streaming_expert_mlp_kernel, layer_num=L,
            skips=tuple(plan["skips"]), hpad=Hpad, dpad=Dpad,
            use_latent=use_latent)

        flops = 2 * E * Tpad * L * Dpad * Hpad
        bytes_accessed = (W.size * 2 * nt + B.size * 4
                          + xp.size * 4 + (latp.size * 4 if use_latent else 0)
                          + E * Tpad * Hpad * 4)

        out = pl.pallas_call(
            kernel,
            out_shape=jax.ShapeDtypeStruct((E, Tpad, Hpad), jnp.float32),
            grid_spec=pltpu.PrefetchScalarGridSpec(
                num_scalar_prefetch=0, grid=(E, nt, L),
                in_specs=in_specs,
                out_specs=pl.BlockSpec((1, tm, Hpad), lambda e, t, l: (e, t, 0)),
                scratch_shapes=[
                    pltpu.VMEM((tm, Dpad), jnp.bfloat16),   # h (+ latent tail)
                    pltpu.VMEM((tm, Hpad), jnp.float32),    # residual x
                    pltpu.VMEM((tm, Hpad), jnp.float32),    # acc (pl.when skip add)
                ],
            ),
            compiler_params=pltpu.CompilerParams(
                dimension_semantics=("parallel", "parallel", "arbitrary"),
                vmem_limit_bytes=plan["vmem_limit"]),
            cost_estimate=pl.CostEstimate(flops=int(flops), transcendentals=0,
                                          bytes_accessed=int(bytes_accessed)),
        )(*inputs)

    out = out[:, :T, :model_dim]
    return jnp.expand_dims(out, 0)                           # (1, E, T, model_dim)


def make_expert_mlp(weights, biases, *, model_dim, latent_dim, skips, layer_num,
                    force_streaming=False):
    """Packs parameters once (padding/bf16 cast hoisted out of the forward path)
    and returns forward(x) -> (1, E, T, model_dim)."""
    E = int(weights[0].shape[0])
    plan = _make_plan(model_dim=model_dim, latent_dim=latent_dim, skips=skips,
                      layer_num=layer_num, local_experts=E,
                      force_streaming=force_streaming)
    packed = _pack_params(weights, biases, plan)

    def forward(x):
        return _expert_mlp_forward(x, packed, plan)

    return forward


# --------------------------------------------------------------------------- #
# Pure-JAX reference and synthetic init
# --------------------------------------------------------------------------- #

def expert_mlp_reference(x, weights, biases, *, model_dim, latent_dim, skips,
                         layer_num, matmul_dtype=jnp.float32):
    """Pure-JAX reference.  matmul_dtype=bf16 matches the kernel's precision
    recipe (bf16 matmul inputs, f32 accumulation, f32 bias/residual)."""
    x = jnp.squeeze(x, 0)
    if latent_dim != 0:
        part_latents = x[..., model_dim:]
        x = x[..., :model_dim]
    coded_layer = [0] + (list(skips) if skips is not None else [])
    h = x
    for layer_id in range(layer_num):
        if latent_dim != 0 and skips is not None and layer_id in coded_layer:
            h_in = jnp.concatenate([h, part_latents], axis=-1)
        else:
            h_in = h
        w = weights[layer_id].astype(matmul_dtype)
        h = jnp.einsum("etd,edh->eth", h_in.astype(matmul_dtype), w,
                       preferred_element_type=jnp.float32) + biases[layer_id]
        is_skip = skips is not None and layer_id in skips
        if is_skip:
            h = h + x
        if layer_id < layer_num - 1:
            h = jnp.maximum(h, 0.0)
        if is_skip:
            x = h
    return jnp.expand_dims(h, 0)


def init_params(key, *, model_dim, local_experts, layer_num, skips, latent_dim,
                init_factor=1.0):
    """Synthetic init mimicking nn.Linear default (uniform) * init_factor."""
    hidden_dim = model_dim
    coded_dim = model_dim + latent_dim
    coded_layer = [0] + (list(skips) if skips is not None else [])
    weights, biases = [], []
    for j in range(layer_num):
        d_in = coded_dim if j in coded_layer else model_dim
        bound = 1.0 / (d_in ** 0.5)
        key, kw, kb = jax.random.split(key, 3)
        w = jax.random.uniform(kw, (local_experts, d_in, hidden_dim),
                               minval=-bound, maxval=bound,
                               dtype=jnp.float32) * init_factor
        b = jax.random.uniform(kb, (local_experts, 1, hidden_dim),
                               minval=-bound, maxval=bound,
                               dtype=jnp.float32) * init_factor
        weights.append(w)
        biases.append(b)
    return weights, biases


# --------------------------------------------------------------------------- #
# Main
# --------------------------------------------------------------------------- #

if __name__ == "__main__":
    model_dim = 32
    latent_dim = 8
    local_experts = 2
    layer_num = 3
    skips = [1]
    tokens = 16

    key = jax.random.PRNGKey(0)
    key, kx = jax.random.split(key)
    # input: (1, E, T, model_dim + latent_dim)
    x = jax.random.normal(
        kx, (1, local_experts, tokens, model_dim + latent_dim), dtype=jnp.float32)

    weights, biases = init_params(
        key, model_dim=model_dim, local_experts=local_experts,
        layer_num=layer_num, skips=skips, latent_dim=latent_dim, init_factor=1.0)

    # Matched-precision reference (bf16 matmul inputs, f32 accumulation).
    ref_bf16 = expert_mlp_reference(
        x, weights, biases, model_dim=model_dim, latent_dim=latent_dim,
        skips=skips, layer_num=layer_num, matmul_dtype=jnp.bfloat16)
    # Full-f32 reference (torch semantics) — informational only.
    ref_f32 = expert_mlp_reference(
        x, weights, biases, model_dim=model_dim, latent_dim=latent_dim,
        skips=skips, layer_num=layer_num, matmul_dtype=jnp.float32)

    # Primary path: per-expert weight stack resident in VMEM.
    fwd_resident = make_expert_mlp(
        weights, biases, model_dim=model_dim, latent_dim=latent_dim,
        skips=skips, layer_num=layer_num)
    out_r = jax.block_until_ready(fwd_resident(x))
    assert out_r.shape == (1, local_experts, tokens, model_dim)
    err_r = float(jnp.max(jnp.abs(out_r - ref_bf16)))
    assert jnp.allclose(out_r, ref_bf16, atol=1e-3, rtol=1e-3), err_r

    # Fallback path: streamed per-layer weights (exercised explicitly here).
    fwd_streaming = make_expert_mlp(
        weights, biases, model_dim=model_dim, latent_dim=latent_dim,
        skips=skips, layer_num=layer_num, force_streaming=True)
    out_s = jax.block_until_ready(fwd_streaming(x))
    assert out_s.shape == (1, local_experts, tokens, model_dim)
    err_s = float(jnp.max(jnp.abs(out_s - ref_bf16)))
    assert jnp.allclose(out_s, ref_bf16, atol=1e-3, rtol=1e-3), err_s

    _ = float(jnp.max(jnp.abs(out_r - ref_f32)))   # bf16-vs-f32 drift (informational)

    print("KERNEL_OK")
</pallas_src>

<mosaic_0001>
module attributes {stable_mosaic.version = 11 : i64} {
  func.func @_resident_expert_mlp_kernel(%arg0: i32, %arg1: i32, %arg2: memref<1x16x128xf32, #tpu.memory_space<vmem>>, %arg3: memref<1x16x128xf32, #tpu.memory_space<vmem>>, %arg4: memref<3x1x128x128xbf16, #tpu.memory_space<vmem>>, %arg5: memref<2x1x128x128xbf16, #tpu.memory_space<vmem>>, %arg6: memref<3x1x1x128xf32, #tpu.memory_space<vmem>>, %arg7: memref<1x16x128xf32, #tpu.memory_space<vmem>>) attributes {dimension_semantics = [#tpu.dimension_semantics<parallel>, #tpu.dimension_semantics<parallel>], iteration_bounds = array<i64: 2, 1>, scalar_prefetch = 0 : i64, scratch_operands = 0 : i64, tpu.core_type = #tpu.core_type<tc>, window_params = [{transform_indices = @transform_0, window_bounds = array<i64: 1, 16, 128>}, {transform_indices = @transform_1, window_bounds = array<i64: 1, 16, 128>}, {transform_indices = @transform_2, window_bounds = array<i64: 3, 1, 128, 128>}, {transform_indices = @transform_3, window_bounds = array<i64: 2, 1, 128, 128>}, {transform_indices = @transform_4, window_bounds = array<i64: 3, 1, 1, 128>}, {transform_indices = @transform_5, window_bounds = array<i64: 1, 16, 128>}]} {
    %c0 = arith.constant 0 : index
    %c0_0 = arith.constant 0 : index
    %c0_1 = arith.constant 0 : index
    %0 = vector.load %arg2[%c0, %c0_0, %c0_1] : memref<1x16x128xf32, #tpu.memory_space<vmem>>, vector<1x16x128xf32>
    %1 = vector.shape_cast %0 : vector<1x16x128xf32> to vector<16x128xf32>
    %2 = arith.truncf %1 : vector<16x128xf32> to vector<16x128xbf16>
    %c0_2 = arith.constant 0 : index
    %c0_3 = arith.constant 0 : index
    %c0_4 = arith.constant 0 : index
    %3 = vector.load %arg3[%c0_2, %c0_3, %c0_4] : memref<1x16x128xf32, #tpu.memory_space<vmem>>, vector<1x16x128xf32>
    %4 = vector.shape_cast %3 : vector<1x16x128xf32> to vector<16x128xf32>
    %5 = arith.truncf %4 : vector<16x128xf32> to vector<16x128xbf16>
    %c0_5 = arith.constant 0 : index
    %c0_6 = arith.constant 0 : index
    %c0_7 = arith.constant 0 : index
    %c0_8 = arith.constant 0 : index
    %6 = vector.load %arg4[%c0_5, %c0_6, %c0_7, %c0_8] : memref<3x1x128x128xbf16, #tpu.memory_space<vmem>>, vector<1x1x128x128xbf16>
    %7 = vector.shape_cast %6 : vector<1x1x128x128xbf16> to vector<128x128xbf16>
    %cst = arith.constant dense<0.000000e+00> : vector<16x128xf32>
    %8 = tpu.matmul %2, %7, %cst {dimension_numbers = #tpu.dot_dimension_numbers<[1], [0], [0], [1], [0, 0, 1, 1], [], []>} : vector<16x128xbf16>, vector<128x128xbf16>, vector<16x128xf32> -> vector<16x128xf32>
    %c0_9 = arith.constant 0 : index
    %c0_10 = arith.constant 0 : index
    %c0_11 = arith.constant 0 : index
    %c0_12 = arith.constant 0 : index
    %9 = vector.load %arg5[%c0_9, %c0_10, %c0_11, %c0_12] : memref<2x1x128x128xbf16, #tpu.memory_space<vmem>>, vector<1x1x128x128xbf16>
    %10 = vector.shape_cast %9 : vector<1x1x128x128xbf16> to vector<128x128xbf16>
    %cst_13 = arith.constant dense<0.000000e+00> : vector<16x128xf32>
    %11 = tpu.matmul %5, %10, %cst_13 {dimension_numbers = #tpu.dot_dimension_numbers<[1], [0], [0], [1], [0, 0, 1, 1], [], []>} : vector<16x128xbf16>, vector<128x128xbf16>, vector<16x128xf32> -> vector<16x128xf32>
    %12 = arith.addf %8, %11 : vector<16x128xf32>
    %c0_14 = arith.constant 0 : index
    %c0_15 = arith.constant 0 : index
    %c0_16 = arith.constant 0 : index
    %c0_17 = arith.constant 0 : index
    %13 = vector.load %arg6[%c0_14, %c0_15, %c0_16, %c0_17] : memref<3x1x1x128xf32, #tpu.memory_space<vmem>>, vector<1x1x1x128xf32>
    %14 = vector.shape_cast %13 : vector<1x1x1x128xf32> to vector<1x128xf32>
    %15 = vector.broadcast %14 : vector<1x128xf32> to vector<16x128xf32>
    %16 = arith.addf %12, %15 : vector<16x128xf32>
    %cst_18 = arith.constant 0.000000e+00 : f32
    %17 = vector.broadcast %cst_18 : f32 to vector<16x128xf32>
    %18 = arith.maximumf %16, %17 : vector<16x128xf32>
    %19 = arith.truncf %18 : vector<16x128xf32> to vector<16x128xbf16>
    %c1 = arith.constant 1 : index
    %c0_19 = arith.constant 0 : index
    %c0_20 = arith.constant 0 : index
    %c0_21 = arith.constant 0 : index
    %20 = vector.load %arg4[%c1, %c0_19, %c0_20, %c0_21] : memref<3x1x128x128xbf16, #tpu.memory_space<vmem>>, vector<1x1x128x128xbf16>
    %21 = vector.shape_cast %20 : vector<1x1x128x128xbf16> to vector<128x128xbf16>
    %cst_22 = arith.constant dense<0.000000e+00> : vector<16x128xf32>
    %22 = tpu.matmul %19, %21, %cst_22 {dimension_numbers = #tpu.dot_dimension_numbers<[1], [0], [0], [1], [0, 0, 1, 1], [], []>} : vector<16x128xbf16>, vector<128x128xbf16>, vector<16x128xf32> -> vector<16x128xf32>
    %c1_23 = arith.constant 1 : index
    %c0_24 = arith.constant 0 : index
    %c0_25 = arith.constant 0 : index
    %c0_26 = arith.constant 0 : index
    %23 = vector.load %arg5[%c1_23, %c0_24, %c0_25, %c0_26] : memref<2x1x128x128xbf16, #tpu.memory_space<vmem>>, vector<1x1x128x128xbf16>
    %24 = vector.shape_cast %23 : vector<1x1x128x128xbf16> to vector<128x128xbf16>
    %cst_27 = arith.constant dense<0.000000e+00> : vector<16x128xf32>
    %25 = tpu.matmul %5, %24, %cst_27 {dimension_numbers = #tpu.dot_dimension_numbers<[1], [0], [0], [1], [0, 0, 1, 1], [], []>} : vector<16x128xbf16>, vector<128x128xbf16>, vector<16x128xf32> -> vector<16x128xf32>
    %26 = arith.addf %22, %25 : vector<16x128xf32>
    %c1_28 = arith.constant 1 : index
    %c0_29 = arith.constant 0 : index
    %c0_30 = arith.constant 0 : index
    %c0_31 = arith.constant 0 : index
    %27 = vector.load %arg6[%c1_28, %c0_29, %c0_30, %c0_31] : memref<3x1x1x128xf32, #tpu.memory_space<vmem>>, vector<1x1x1x128xf32>
    %28 = vector.shape_cast %27 : vector<1x1x1x128xf32> to vector<1x128xf32>
    %29 = vector.broadcast %28 : vector<1x128xf32> to vector<16x128xf32>
    %30 = arith.addf %26, %29 : vector<16x128xf32>
    %31 = arith.addf %30, %1 : vector<16x128xf32>
    %cst_32 = arith.constant 0.000000e+00 : f32
    %32 = vector.broadcast %cst_32 : f32 to vector<16x128xf32>
    %33 = arith.maximumf %31, %32 : vector<16x128xf32>
    %34 = arith.truncf %33 : vector<16x128xf32> to vector<16x128xbf16>
    %c2 = arith.constant 2 : index
    %c0_33 = arith.constant 0 : index
    %c0_34 = arith.constant 0 : index
    %c0_35 = arith.constant 0 : index
    %35 = vector.load %arg4[%c2, %c0_33, %c0_34, %c0_35] : memref<3x1x128x128xbf16, #tpu.memory_space<vmem>>, vector<1x1x128x128xbf16>
    %36 = vector.shape_cast %35 : vector<1x1x128x128xbf16> to vector<128x128xbf16>
    %cst_36 = arith.constant dense<0.000000e+00> : vector<16x128xf32>
    %37 = tpu.matmul %34, %36, %cst_36 {dimension_numbers = #tpu.dot_dimension_numbers<[1], [0], [0], [1], [0, 0, 1, 1], [], []>} : vector<16x128xbf16>, vector<128x128xbf16>, vector<16x128xf32> -> vector<16x128xf32>
    %c2_37 = arith.constant 2 : index
    %c0_38 = arith.constant 0 : index
    %c0_39 = arith.constant 0 : index
    %c0_40 = arith.constant 0 : index
    %38 = vector.load %arg6[%c2_37, %c0_38, %c0_39, %c0_40] : memref<3x1x1x128xf32, #tpu.memory_space<vmem>>, vector<1x1x1x128xf32>
    %39 = vector.shape_cast %38 : vector<1x1x1x128xf32> to vector<1x128xf32>
    %40 = vector.broadcast %39 : vector<1x128xf32> to vector<16x128xf32>
    %41 = arith.addf %37, %40 : vector<16x128xf32>
    %c0_41 = arith.constant 0 : index
    %c0_42 = arith.constant 0 : index
    %c0_43 = arith.constant 0 : index
    %42 = vector.load %arg7[%c0_41, %c0_42, %c0_43] : memref<1x16x128xf32, #tpu.memory_space<vmem>>, vector<1x16x128xf32>
    %43 = vector.shape_cast %42 : vector<1x16x128xf32> to vector<16x128xf32>
    %44 = vector.shape_cast %41 : vector<16x128xf32> to vector<1x16x128xf32>
    tpu.vector_store %arg7[%c0_41, %c0_42, %c0_43], %44 {strides = array<i32>} : memref<1x16x128xf32, #tpu.memory_space<vmem>>, vector<1x16x128xf32>,
    return
  }
  func.func @transform_0(%arg0: i32, %arg1: i32) -> (i32, i32, i32) {
    %c0_i32 = arith.constant 0 : i32
    %c0_i32_0 = arith.constant 0 : i32
    return %arg0, %arg1, %c0_i32 : i32, i32, i32
  }
  func.func @transform_1(%arg0: i32, %arg1: i32) -> (i32, i32, i32) {
    %c0_i32 = arith.constant 0 : i32
    %c0_i32_0 = arith.constant 0 : i32
    return %arg0, %arg1, %c0_i32 : i32, i32, i32
  }
  func.func @transform_2(%arg0: i32, %arg1: i32) -> (i32, i32, i32, i32) {
    %c0_i32 = arith.constant 0 : i32
    %c0_i32_0 = arith.constant 0 : i32
    %c0_i32_1 = arith.constant 0 : i32
    %c0_i32_2 = arith.constant 0 : i32
    return %c0_i32, %arg0, %c0_i32_0, %c0_i32_1 : i32, i32, i32, i32
  }
  func.func @transform_3(%arg0: i32, %arg1: i32) -> (i32, i32, i32, i32) {
    %c0_i32 = arith.constant 0 : i32
    %c0_i32_0 = arith.constant 0 : i32
    %c0_i32_1 = arith.constant 0 : i32
    %c0_i32_2 = arith.constant 0 : i32
    return %c0_i32, %arg0, %c0_i32_0, %c0_i32_1 : i32, i32, i32, i32
  }
  func.func @transform_4(%arg0: i32, %arg1: i32) -> (i32, i32, i32, i32) {
    %c0_i32 = arith.constant 0 : i32
    %c0_i32_0 = arith.constant 0 : i32
    %c0_i32_1 = arith.constant 0 : i32
    %c0_i32_2 = arith.constant 0 : i32
    return %c0_i32, %arg0, %c0_i32_0, %c0_i32_1 : i32, i32, i32, i32
  }
  func.func @transform_5(%arg0: i32, %arg1: i32) -> (i32, i32, i32) {
    %c0_i32 = arith.constant 0 : i32
    %c0_i32_0 = arith.constant 0 : i32
    return %arg0, %arg1, %c0_i32 : i32, i32, i32
  }
}

</mosaic_0001>

<bundles_post_ra>
// kernel: tpu_custom_call.1
= control target key start
LH: loop header
LB: loop body
LE: loop exit
PB: predicated region body
PF: predicated region fallthrough
CT: control target
= control target key end

     0   :  { %s2266_s0 = inlined_call_operand.hbm [shape: f32[2,16,128], index: 0, kind: input, shape index: {}]   ;;  %s2267_s1 = inlined_call_operand.hbm [shape: f32[2,16,128], index: 1, kind: input, shape index: {}]   ;;  %s2268_s2 = inlined_call_operand.hbm [shape: bf16[3,2,128,128], index: 2, kind: input, shape index: {}]   ;;  %s2269_s3 = inlined_call_operand.hbm [shape: bf16[2,2,128,128], index: 3, kind: input, shape index: {}]   ;;  %s2270_s4 = inlined_call_operand.vmem [shape: f32[3,2,1,128], index: 4, kind: input, shape index: {}]   ;;  %s2271_s5 = inlined_call_operand.hbm [shape: f32[2,16,128], index: 5, kind: output, shape index: {}]  }
   0x1   :  { %2277 = sst [smem:[#allocation25_spill]] %s2266_s0 }
   0x2   :  { %10 = vsyncpa [#allocation3], 0 }
   0x3   :  { %12 = vsyncpa [#allocation3 + $0x1], 0 }
   0x4   :  { %13 = vsyncpa [#allocation6], 0 }
   0x5   :  { %15 = vsyncpa [#allocation6 + $0x1], 0 }
   0x6   :  { %16 = vsyncpa [#allocation9], 0 }
   0x7   :  { %18 = vsyncpa [#allocation9 + $0x1], 0 }
   0x8   :  { %19 = vsyncpa [#allocation4], 0 }
   0x9   :  { %21 = vsyncpa [#allocation4 + $0x1], 0  ;;  %s1866_s18 = smov 0   ;;  %s1868_s19 = smov 0  }
   0xa   :  { %s1870_s20 = smov 0   ;;  %s1872_s21 = smov 0  }
   0xb   :  { %s1874_s22 = smov 0   ;;  %s1876_s23 = smov 0  }
   0xc LB: > { %2278 = sst [smem:[#allocation22_spill]] %s1801_s20  ;;  %s1897_s24 = sadd.s32 4294967295, %s1813_s23   ;;  %s1813_s23 = sphi %s1876_s23, %s27_s23   ;;  %s1809_s22 = sphi %s1874_s22, %s2296_s22   ;;  %s1805_s21 = sphi %s1872_s21, %s2295_s21   ;;  %s1801_s20 = sphi %s1870_s20, %s2291_s20   ;;  %s1797_s19 = sphi %s1868_s19, %s2294_s19   ;;  %s1793_s18 = sphi %s1866_s18, %s2293_s18  }
   0xd   : > { %s1257_s25 = sadd.s32 4294967294, %s1813_s23   ;;  %s39_s26 = sadd.s32 1, %s1809_s22 }
   0xe   : > { %s48_s27 = sadd.s32 1, %s1801_s20  ;;  %p41_p0 = scmp.ge.s32.totalorder %s39_s26, 2 }
   0xf   : > { %p55_p1 = scmp.ne.s32.totalorder %s1801_s20, %s1797_s19  ;;  %p56_p2 = scmp.eq.s32.totalorder %s1813_s23, 0 }
  0x10   : > { %p61_p3 = scmp.ne.s32.totalorder %s1797_s19, %s1793_s18  ;;  %s2298_s26 = smov (%p41_p0, %s39_s26), 0 }
  0x11   : > { %2279 = sst [smem:[#allocation23_spill]] %s2298_s26  ;;  %p1909_p4 = por %p56_p2, %p55_p1 }
  0x12   : > { %p62_p5 = scmp.eq.s32.totalorder %s1897_s24, 0  ;;  %s43_s29 = ssub.s32 %s1809_s22, %s2298_s26 }
  0x13   : > { %p193_p6 = scmp.eq.s32.totalorder %s1897_s24, 1  ;;  %p46_p7 = scmp.eq.s32.totalorder %s43_s29, 0 }
  0x14   : > { %p1917_p8 = por %p62_p5, %p61_p3  ;;  %p199_p10 = scmp.eq.s32.totalorder %s1257_s25, 1 }
  0x15   : > { %p1921_p9 = por %p193_p6, %p55_p1  ;;  %p2273_p12 = scmp.ge.s32.totalorder %s1813_s23, 2 }
  0x16   : > { %s1926_s7 = scalar_select %p46_p7, %s1801_s20, %s48_s27  }
  0x17   : > { %s2282_s6 = scalar_select %p1921_p9, 1, 0 }
  0x18   : > { %2283 = sst [smem:[#allocation24_spill]] %s1926_s7  ;;  %p1928_p11 = por %p199_p10, %p61_p3 }
  0x19   : > { %215 = sbr.rel (%p2273_p12) target bundleno = 115 (0x73), region = 16  ;;  %s1936_s9 = sand.u32 (!%p2273_p12), 1, %s1801_s20  }
  0x1a   : > { %s2284_s8 = scalar_select %p1928_p11, 1, 0 }
  0x1b   : > { %s2272_s10 = sshll.u32 (!%p2273_p12), %s1809_s22, 8  ;;  %s1260_s11 = sshll.u32 (!%p2273_p12), %s1936_s9, 4 }
  0x1c   : > { %s2285_s0 = sld [smem:[#allocation25_spill]] (!%p2273_p12)  ;;  %s223_s15 = scalar_lea.vmem (!%p2273_p12), [#allocation2], %s1260_s11 }
  0x1d   : > { %s232_s16 = sshll.u32 (!%p2273_p12), %s223_s15, 4  ;;  %s220_s17 = scalar_lea.sflag (!%p2273_p12), [#allocation3], %s1936_s9  ;;  %s1949_s16 = int_to_ptr.vmem [resolvable:$true] %s232_s16 }
  0x22   : > { %s1945_s14 = scalar_lea.hbm %s2285_s0, %s2272_s10  ;;  %s1671_s12 = scalar_lea.hbm %s2285_s0, 512 }
  0x23   : > { %s1667_s25 = scalar_lea.hbm %s1945_s14, 256  ;;  %p1672_p2 = scmp.lt.u32.totalorder %s1945_s14, %s2285_s0 }
  0x24   : > { %p1668_p13 = scmp.ne.s32.totalorder %s1945_s14, %s1667_s25  ;;  %p1673_p3 = scmp.lt.u32.totalorder %s1671_s12, %s1667_s25 }
  0x25   : > { %p1675_p6 = scmp.lt.u32.totalorder %s1667_s25, %s1945_s14 }
  0x26   : > { %p1669_p0 = pnand %p1668_p13, %p1909_p4  ;;  %p1674_p5 = por %p1673_p3, %p1672_p2 }
  0x28   : > { %p1670_p1 = pneg %p1669_p0  ;;  %p1676_p7 = por %p1675_p6, %p1674_p5 }
  0x2a   : > { %p1677_p10 = pnand %p1676_p7, %p1670_p1 }
  0x2c   : > { %1680 = shalt.err (!%p1677_p10)
}
  0x2d   : > { %s1681_s15 = scalar_lea.vmem %s1949_s16, 256  ;;  %s1815_s27 = smov [#allocation2]  }
  0x2e   : > { %p1682_p13 = scmp.ne.s32.totalorder %s1949_s16, %s1681_s15  ;;  %s1685_s29 = sshll.u32 %s1815_s27, 4  ;;  %s1686_s29 = int_to_ptr.vmem [resolvable:$false] %s1685_s29 }
  0x2f   : > { %s1687_s10 = scalar_lea.vmem %s1686_s29, 512  ;;  %p1688_p11 = scmp.lt.s32.totalorder %s1949_s16, %s1686_s29 }
  0x30   : > { %p1683_p0 = pnand %p1682_p13, %p1909_p4  ;;  %p1689_p9 = scmp.lt.s32.totalorder %s1687_s10, %s1681_s15 }
  0x32   : > { %p1684_p12 = pneg %p1683_p0  ;;  %p1690_p2 = por %p1689_p9, %p1688_p11 }
  0x34   : > { %p1691_p3 = pnand %p1690_p2, %p1684_p12 }
  0x36   : > { %1694 = shalt.err (!%p1691_p3)
}
  0x37   : > { %s1816_s25 = smov 128   ;;  %s1817_s12 = smov 8  }
  0x38   : > { %1532 = dma.hbm_to_vmem [thread:$0]  (%p1909_p4), %s1945_s14, 256, %s1949_s16, %s220_s17, %s1816_s25, %s1816_s25, %s1817_s12  }
  0x39   : > { %s242_s13 = sand.u32 1, %s1813_s23   ;;  %s2286_s15 = sshll.u32 %s1809_s22, 8 }
  0x3a   : > { %s1984_s10 = scalar_lea.hbm %s2267_s1, %s2286_s15  ;;  %s246_s0 = scalar_lea.vmem [#allocation5], %s1260_s11 }
  0x3b   : > { %s255_s26 = sshll.u32 %s246_s0, 4  ;;  %s1990_s7 = scalar_lea.sflag [#allocation6], %s242_s13  ;;  %s1988_s26 = int_to_ptr.vmem [resolvable:$true] %s255_s26 }
  0x3c   : > { %s1695_s20 = scalar_lea.hbm %s1984_s10, 256  ;;  %s1699_s17 = scalar_lea.hbm %s2267_s1, 512 }
  0x3d   : > { %p1696_p9 = scmp.ne.s32.totalorder %s1984_s10, %s1695_s20  ;;  %p1700_p1 = scmp.lt.u32.totalorder %s1984_s10, %s2267_s1 }
  0x3e   : > { %p1701_p5 = scmp.lt.u32.totalorder %s1699_s17, %s1695_s20  ;;  %p1703_p7 = scmp.lt.u32.totalorder %s1695_s20, %s1984_s10 }
  0x3f   : > { %p1697_p11 = pnand %p1696_p9, %p1909_p4 }
  0x40   : > { %p1702_p6 = por %p1701_p5, %p1700_p1 }
  0x41   : > { %p1698_p12 = pneg %p1697_p11 }
  0x42   : > { %p1704_p10 = por %p1703_p7, %p1702_p6 }
  0x44   : > { %p1705_p13 = pnand %p1704_p10, %p1698_p12 }
  0x46   : > { %1708 = shalt.err (!%p1705_p13)
}
  0x47   : > { %s1709_s0 = scalar_lea.vmem %s1988_s26, 256  ;;  %s1818_s11 = smov [#allocation5]  }
  0x48   : > { %p1710_p0 = scmp.ne.s32.totalorder %s1988_s26, %s1709_s0  ;;  %s1713_s13 = sshll.u32 %s1818_s11, 4  ;;  %s1714_s13 = int_to_ptr.vmem [resolvable:$false] %s1713_s13 }
  0x49   : > { %s1715_s29 = scalar_lea.vmem %s1714_s13, 512  ;;  %p1716_p9 = scmp.lt.s32.totalorder %s1988_s26, %s1714_s13 }
  0x4a   : > { %p1711_p2 = pnand %p1710_p0, %p1909_p4  ;;  %p1717_p11 = scmp.lt.s32.totalorder %s1715_s29, %s1709_s0 }
  0x4c   : > { %p1712_p3 = pneg %p1711_p2  ;;  %p1718_p1 = por %p1717_p11, %p1716_p9 }
  0x4e   : > { %p1719_p5 = pnand %p1718_p1, %p1712_p3 }
  0x50   : > { %1722 = shalt.err (!%p1719_p5)
}
  0x51   : > { %1533 = dma.hbm_to_vmem [thread:$0]  (%p1909_p4), %s1984_s10, 256, %s1988_s26, %s1990_s7, %s1816_s25, %s1816_s25, %s1817_s12  }
  0x52   : > { %s1528_s20 = smul.u32 192, %s1936_s9  ;;  %s1380_s14 = sshll.u32 %s1809_s22, 10 }
  0x53   : > { %s1819_s16 = smov 2048   ;;  %s275_s26 = scalar_lea.hbm %s2268_s2, %s1380_s14 }
  0x54   : > { %1535 = sst [smem:[#allocation13]] (%p1909_p4), %s1819_s16  ;;  %s269_s12 = scalar_lea.vmem [#allocation7], %s1528_s20 }
  0x55   : > { %s1534_s17 = scalar_select %p1909_p4, [#allocation0], [#allocation16] }
  0x56   : > { %s288_s10 = sshll.u32 %s269_s12, 4  ;;  %s1820_s0 = smov 1024   ;;  %s289_s10 = int_to_ptr.vmem [resolvable:$true] %s288_s10 }
  0x57   : > { %s280_s25 = sld [smem:[%s1534_s17]]   ;;  %s1821_s11 = smov 16  }
  0x58   : > { %1536 = sst [smem:[#allocation13 + $0x1]] (%p1909_p4), %s1820_s0  ;;  %s1822_s13 = smov 64  }
  0x59   : > { %1537 = sst [smem:[#allocation13 + $0x2]] (%p1909_p4), %s1821_s11  ;;  %s1823_s29 = smov 4  }
  0x5a   : > { %1538 = sst [smem:[#allocation13 + $0x3]] (%p1909_p4), %s1822_s13  ;;  %s1824_s15 = smov [#allocation12]  }
  0x5b   : > { %1539 = sst [smem:[#allocation13 + $0x4]] (%p1909_p4), %s1822_s13 }
  0x5c   : > { %1540 = sst [smem:[#allocation13 + $0x5]] (%p1909_p4), %s1823_s29 }
  0x5d   : > { %s1268_s16 = sshll.u32 %s280_s25, 26 }
  0x5e   : > { %s1269_s17 = sadd.s32 134217728, %s1268_s16 }
  0x5f   : > { %1541 = dma.general (%p1909_p4), %s275_s26, 3072, %s289_s10, %s1990_s7, %s1824_s15, [#allocation13], %s1269_s17, 0  }
  0x60   : > { %s1270_s20 = sshll.u32 %s1936_s9, 7  ;;  %s321_s0 = scalar_lea.hbm %s2269_s3, %s1380_s14 }
  0x61   : > { %s1542_s11 = scalar_select %p1909_p4, [#allocation0], [#allocation17] }
  0x62   : > { %s315_s25 = scalar_lea.vmem [#allocation8], %s1270_s20  ;;  %s1825_s7 = smov 2048  }
  0x63   : > { %s334_s13 = sshll.u32 %s315_s25, 4  ;;  %s326_s29 = sld [smem:[%s1542_s11]]   ;;  %s335_s13 = int_to_ptr.vmem [resolvable:$true] %s334_s13 }
  0x64   : > { %1543 = sst [smem:[#allocation15]] (%p1909_p4), %s1825_s7  ;;  %s1826_s26 = smov 1024  }
  0x65   : > { %1544 = sst [smem:[#allocation15 + $0x1]] (%p1909_p4), %s1826_s26  ;;  %s1827_s10 = smov 16  }
  0x66   : > { %1545 = sst [smem:[#allocation15 + $0x2]] (%p1909_p4), %s1827_s10  ;;  %s1828_s16 = smov 64  }
  0x67   : > { %1546 = sst [smem:[#allocation15 + $0x3]] (%p1909_p4), %s1828_s16  ;;  %s1829_s17 = smov 4  }
  0x68   : > { %1547 = sst [smem:[#allocation15 + $0x4]] (%p1909_p4), %s1828_s16  ;;  %s312_s20 = scalar_lea.sflag [#allocation9], %s1936_s9 }
  0x69   : > { %s1273_s14 = sshll.u32 %s326_s29, 26  ;;  %1548 = sst [smem:[#allocation15 + $0x5]] (%p1909_p4), %s1829_s17 }
  0x6a   : > { %s1274_s15 = sadd.s32 134217728, %s1273_s14  ;;  %s1830_s27 = smov [#allocation14]  }
  0x6b   : > { %1549 = dma.general (%p1909_p4), %s321_s0, 2048, %s335_s13, %s312_s20, %s1830_s27, [#allocation15], %s1274_s15, 0  }
  0x6c   : > { %356 = sbr.rel (!%p1909_p4) target bundleno = 115 (0x73), region = 36  ;;  %s361_s7 = scalar_lea.vmem (%p1909_p4), %s2270_s4, %s1809_s22 }
  0x6d   : > { %s1529_s12 = smul.u32 (%p1909_p4), 3, %s1936_s9  ;;  %v377_v0 = vld [vmem:[%s361_s7] sm:$0x1] (%p1909_p4)  ;;  %v379_v1 = vld [vmem:[%s361_s7 + $0x2] sm:$0x1] (%p1909_p4) }
  0x6e   : > { %v381_v2 = vld [vmem:[%s361_s7 + $0x4] sm:$0x1] (%p1909_p4) }
  0x6f   : > { %s360_s29 = scalar_lea.vmem (%p1909_p4), [#allocation10], %s1529_s12 }
  0x70   : > { %378 = vst [vmem:[%s360_s29] sm:$0x1] (%p1909_p4), %v377_v0  ;;  %380 = vst [vmem:[%s360_s29 + $0x1] sm:$0x1] (%p1909_p4), %v379_v1 }
  0x71   : > { %382 = vst [vmem:[%s360_s29 + $0x2] sm:$0x1] (%p1909_p4), %v381_v2 }
  0x73 PF: > { %p1275_p12 = scmp.ge.s32.totalorder %s1813_s23, 1  ;;  %p402_p4 = scmp.lt.s32.totalorder %s1813_s23, 3 }
  0x75   : > { %p403_p6 = pnand %p1275_p12, %p402_p4 }
  0x76   : > { %s2070_s28 = sand.u32 (!%p403_p6), 1, %s1797_s19  }
  0x77   : > { %406 = sbr.rel (%p403_p6) target bundleno = 845 (0x34d), region = 70  ;;  %s2073_s9 = sshll.u32 (!%p403_p6), %s2070_s28, 4 }
  0x78   : > { %s409_s0 = scalar_lea.sflag (!%p403_p6), [#allocation3], %s2070_s28  ;;  %s412_s13 = scalar_lea.vmem (!%p403_p6), [#allocation2], %s2073_s9 }
  0x7e   : > { %1776 = dma.done.wait (%p1917_p8), %s409_s0, 256  }
  0x7f   : > { %1778 = vsyncadd (%p1917_p8), %s409_s0, 4294967040  ;;  %s417_s26 = sand.u32 1, %s1897_s24   ;;  %s421_s16 = scalar_lea.vmem [#allocation5], %s2073_s9 }
  0x80   : > { %s418_s10 = scalar_lea.sflag [#allocation6], %s417_s26 }
  0x81   : > { %1780 = dma.done.wait (%p1917_p8), %s418_s10, 3328  }
  0x82   : > { %1782 = vsyncadd (%p1917_p8), %s418_s10, 4294963968  ;;  %s1530_s14 = smul.u32 192, %s2070_s28  ;;  %s1278_s17 = sshll.u32 %s2070_s28, 7 }
  0x83   : > { %s436_s20 = scalar_lea.sflag [#allocation9], %s2070_s28  ;;  %s2092_s27 = scalar_lea.vmem [#allocation8], %s1278_s17 }
  0x84   : > { %s2089_s15 = scalar_lea.vmem [#allocation7], %s1530_s14 }
  0x85   : > { %1784 = dma.done.wait (%p1917_p8), %s436_s20, 2048  }
  0x86   : > { %1786 = vsyncadd (%p1917_p8), %s436_s20, 4294965248  ;;  %v1831_v3 = vmov 0.0   ;;  %vm1832_vm0 = vmmov 0   ;;  %v1627_v4 = vld [vmem:[%s2092_s27] sm:$0xff]   ;;  %v1629_v6 = vld [vmem:[%s2092_s27 + $0x8] sm:$0xff]   ;;  %s1531_s24 = smul.u32 3, %s2070_s28 }
  0x87   : > { %1428 = vmatprep.subr.bf16.mxu0 %v1831_v3  ;;  %1448 = vmatprep.subr.bf16.mxu1 %v1831_v3  ;;  %v1628_v5 = vld [vmem:[%s2089_s15] sm:$0xff]   ;;  %v1630_v7 = vld [vmem:[%s2089_s15 + $0x8] sm:$0xff]   ;;  %v1631_v8 = vld [vmem:[%s2092_s27 + $0x10] sm:$0xff]   ;;  %s491_s12 = scalar_lea.vmem [#allocation11], %s2073_s9  ;;  %s1382_s25 = sshll.u32 %s1805_s21, 8 }
  0x88   : > { %1444 = vmatprep.mubr.msk.bf16.mxu0 %vm1832_vm0, %v1831_v3  ;;  %1464 = vmatprep.mubr.msk.bf16.mxu1 %vm1832_vm0, %v1831_v3  ;;  %v1632_v9 = vld [vmem:[%s2089_s15 + $0x10] sm:$0xff]   ;;  %v1633_v10 = vld [vmem:[%s2092_s27 + $0x18] sm:$0xff]   ;;  %v1635_v12 = vld [vmem:[%s2092_s27 + $0x20] sm:$0xff]   ;;  %s2198_s30 = scalar_lea.vmem [#allocation10], %s1531_s24  ;;  %s1083_s11 = sshll.u32 %s491_s12, 4  ;;  %s2212_s11 = int_to_ptr.vmem [resolvable:$true] %s1083_s11 }
  0x89   : > { %1429 = vmatpush3.bf16.msra.mxu0 %v1627_v4  ;;  %1449 = vmatpush3.bf16.msra.mxu1 %v1628_v5  ;;  %v1634_v11 = vld [vmem:[%s2089_s15 + $0x18] sm:$0xff]   ;;  %v1636_v13 = vld [vmem:[%s2089_s15 + $0x20] sm:$0xff]   ;;  %v1637_v14 = vld [vmem:[%s2092_s27 + $0x28] sm:$0xff]   ;;  %s2217_s0 = scalar_lea.hbm %s2271_s5, %s1382_s25  ;;  %s1068_s9 = scalar_lea.sflag [#allocation4], %s2070_s28 }
  0x8a   : > { %1430 = vmatprep.subr.bf16.mxu0 %v1831_v3  ;;  %1450 = vmatprep.subr.bf16.mxu1 %v1831_v3  ;;  %v1638_v15 = vld [vmem:[%s2089_s15 + $0x28] sm:$0xff]   ;;  %v1639_v16 = vld [vmem:[%s2092_s27 + $0x30] sm:$0xff]   ;;  %v1641_v18 = vld [vmem:[%s2092_s27 + $0x38] sm:$0xff]   ;;  %s1723_s21 = scalar_lea.vmem %s2212_s11, 256  ;;  %p2287_p7 = scmp.ne.s32.totalorder %s2282_s6, 0 }
  0x8b   : > { %v1640_v17 = vld [vmem:[%s2089_s15 + $0x30] sm:$0xff]   ;;  %v1642_v20 = vld [vmem:[%s2089_s15 + $0x38] sm:$0xff]   ;;  %v1643_v24 = vld [vmem:[%s2092_s27 + $0x40] sm:$0xff]   ;;  %p1724_p8 = scmp.ne.s32.totalorder %s2212_s11, %s1723_s21 }
  0x8c   : > { %v499_v19 = vld [vmem:[%s421_s16] sm:$0xff]  ;;  %v500_v21 = vld [vmem:[%s421_s16 + $0x8] sm:$0xff] }
  0x8d   : > { %1431 = vmatpush3.bf16.msra.mxu0 %v1629_v6  ;;  %1451 = vmatpush3.bf16.msra.mxu1 %v1630_v7  ;;  %v2138_v22 = vld [vmem:[%s412_s13] sm:$0xff]  ;;  %v2143_v23 = vld [vmem:[%s412_s13 + $0x8] sm:$0xff]  ;;  %v501_v25 = vpack.c.bf16 %v500_v21, %v499_v19  ;;  %p1725_p10 = pnand %p1724_p8, %p2287_p7  ;;  %s1833_s13 = smov [#allocation11]  }
  0x8e   : > { %1432 = vmatprep.subr.bf16.mxu0 %v1831_v3  ;;  %1452 = vmatprep.subr.bf16.mxu1 %v1831_v3  ;;  %v1644_v26 = vld [vmem:[%s2089_s15 + $0x40] sm:$0xff]   ;;  %v498_v27 = vpack.c.bf16 %v2143_v23, %v2138_v22  ;;  %v1645_v28 = vld [vmem:[%s2092_s27 + $0x48] sm:$0xff]   ;;  %v1647_v30 = vld [vmem:[%s2092_s27 + $0x50] sm:$0xff]   ;;  %s1727_s26 = sshll.u32 %s1833_s13, 4  ;;  %s1728_s26 = int_to_ptr.vmem [resolvable:$false] %s1727_s26 }
  0x8f   : > { %v1646_v29 = vld [vmem:[%s2089_s15 + $0x48] sm:$0xff]   ;;  %v1648_v31 = vld [vmem:[%s2089_s15 + $0x50] sm:$0xff]   ;;  %v1649_v32 = vld [vmem:[%s2092_s27 + $0x58] sm:$0xff]   ;;  %p1726_p13 = pneg %p1725_p10  ;;  %s1729_s10 = scalar_lea.vmem %s1728_s26, 512 }
  0x90   : > { %v1650_v33 = vld [vmem:[%s2089_s15 + $0x58] sm:$0xff]   ;;  %v1651_v34 = vld [vmem:[%s2092_s27 + $0x60] sm:$0xff]   ;;  %v1653_v36 = vld [vmem:[%s2092_s27 + $0x68] sm:$0xff]   ;;  %p1730_p0 = scmp.lt.s32.totalorder %s2212_s11, %s1728_s26  ;;  %p1731_p2 = scmp.lt.s32.totalorder %s1729_s10, %s1723_s21 }
  0x91   : > { %1433 = vmatpush3.bf16.msra.mxu0 %v1631_v8  ;;  %1453 = vmatpush3.bf16.msra.mxu1 %v1632_v9  ;;  %v1652_v35 = vld [vmem:[%s2089_s15 + $0x60] sm:$0xff]   ;;  %v1654_v37 = vld [vmem:[%s2089_s15 + $0x68] sm:$0xff]   ;;  %v1655_v38 = vld [vmem:[%s2092_s27 + $0x70] sm:$0xff]  }
  0x92   : > { %1434 = vmatprep.subr.bf16.mxu0 %v1831_v3  ;;  %1454 = vmatprep.subr.bf16.mxu1 %v1831_v3  ;;  %v1656_v39 = vld [vmem:[%s2089_s15 + $0x70] sm:$0xff]   ;;  %v1657_v40 = vld [vmem:[%s2092_s27 + $0x78] sm:$0xff]   ;;  %v1659_v42 = vld [vmem:[%s2089_s15 + $0x80] sm:$0xff]   ;;  %p1732_p3 = por %p1731_p2, %p1730_p0 }
  0x93   : > { %v1658_v41 = vld [vmem:[%s2089_s15 + $0x78] sm:$0xff]   ;;  %v1660_v43 = vld [vmem:[%s2089_s15 + $0x88] sm:$0xff]   ;;  %v1661_v44 = vld [vmem:[%s2089_s15 + $0x90] sm:$0xff]  }
  0x94   : > { %v1662_v45 = vld [vmem:[%s2089_s15 + $0x98] sm:$0xff]   ;;  %v1663_v46 = vld [vmem:[%s2089_s15 + $0xa0] sm:$0xff]   ;;  %v1664_v4 = vld [vmem:[%s2089_s15 + $0xa8] sm:$0xff]   ;;  %p1733_p9 = pnand %p1732_p3, %p1726_p13 }
  0x95   : > { %1435 = vmatpush3.bf16.msra.mxu0 %v1633_v10  ;;  %1455 = vmatpush3.bf16.msra.mxu1 %v1634_v11  ;;  %v1296_v49 = vld [vmem:[%s2198_s30] ss:$0 sm:$0xff]  ;;  %v1665_v5 = vld [vmem:[%s2089_s15 + $0xb0] sm:$0xff]   ;;  %v1666_v6 = vld [vmem:[%s2089_s15 + $0xb8] sm:$0xff]  }
  0x96   : > { %1436 = vmatprep.subr.bf16.mxu0 %v1831_v3  ;;  %1456 = vmatprep.subr.bf16.mxu1 %v1831_v3  ;;  %v1346_v8 = vld [vmem:[%s2198_s30 + $0x1] ss:$0 sm:$0xff] }
  0x99   : > { %1437 = vmatpush3.bf16.msra.mxu0 %v1635_v12  ;;  %1457 = vmatpush3.bf16.msra.mxu1 %v1636_v13 }
  0x9a   : > { %1438 = vmatprep.subr.bf16.mxu0 %v1831_v3  ;;  %1458 = vmatprep.subr.bf16.mxu1 %v1831_v3 }
  0x9d   : > { %1439 = vmatpush3.bf16.msra.mxu0 %v1637_v14  ;;  %1459 = vmatpush3.bf16.msra.mxu1 %v1638_v15 }
  0x9e   : > { %1440 = vmatprep.subr.bf16.mxu0 %v1831_v3  ;;  %1460 = vmatprep.subr.bf16.mxu1 %v1831_v3 }
  0xa1   : > { %1441 = vmatpush3.bf16.msra.mxu0 %v1639_v16  ;;  %1461 = vmatpush3.bf16.msra.mxu1 %v1640_v17 }
  0xa2   : > { %1442 = vmatprep.subr.bf16.mxu0 %v1831_v3  ;;  %1462 = vmatprep.subr.bf16.mxu1 %v1831_v3 }
  0xa5   : > { %1443 = vmatpush3.bf16.msra.mxu0 %v1641_v18  ;;  %1463 = vmatpush3.bf16.msra.mxu1 %v1642_v20  ;;  %v1364_v20 = vld [vmem:[%s2198_s30 + $0x2] ss:$0 sm:$0xff] }
  0xa6   : > { %1468 = vmatprep.subr.bf16.mxu0 %v1831_v3  ;;  %1488 = vmatprep.subr.bf16.mxu1 %v1831_v3 }
  0xa8   : > { %1445 = vmatmul.mubr.bf16.vlgmr.msra.gmra.mrb[0].mxu0 %v501_v25  ;;  %1465 = vmatmul.mubr.bf16.vlgmr.msra.gmra.mrb[0].mxu1 %v498_v27 }
  0xa9   : > { %1469 = vmatpush3.bf16.msra.mxu0 %v1643_v24  ;;  %1489 = vmatpush3.bf16.msra.mxu1 %v1644_v26 }
  0xaa   : > { %1470 = vmatprep.subr.bf16.mxu0 %v1831_v3  ;;  %1490 = vmatprep.subr.bf16.mxu1 %v1831_v3 }
  0xab   : > { %1484 = vmatprep.mubr.msk.bf16.mxu0 %vm1832_vm0, %v1831_v3  ;;  %1504 = vmatprep.mubr.msk.bf16.mxu1 %vm1832_vm0, %v1831_v3 }
  0xad   : > { %1471 = vmatpush3.bf16.msra.mxu0 %v1645_v28  ;;  %1491 = vmatpush3.bf16.msra.mxu1 %v1646_v29 }
  0xae   : > { %1472 = vmatprep.subr.bf16.mxu0 %v1831_v3  ;;  %1492 = vmatprep.subr.bf16.mxu1 %v1831_v3 }
  0xb1   : > { %1473 = vmatpush3.bf16.msra.mxu0 %v1647_v30  ;;  %1493 = vmatpush3.bf16.msra.mxu1 %v1648_v31 }
  0xb2   : > { %1474 = vmatprep.subr.bf16.mxu0 %v1831_v3  ;;  %1494 = vmatprep.subr.bf16.mxu1 %v1831_v3 }
  0xb5   : > { %1475 = vmatpush3.bf16.msra.mxu0 %v1649_v32  ;;  %1495 = vmatpush3.bf16.msra.mxu1 %v1650_v33 }
  0xb6   : > { %1476 = vmatprep.subr.bf16.mxu0 %v1831_v3  ;;  %1496 = vmatprep.subr.bf16.mxu1 %v1831_v3 }
  0xb9   : > { %1477 = vmatpush3.bf16.msra.mxu0 %v1651_v34  ;;  %1497 = vmatpush3.bf16.msra.mxu1 %v1652_v35 }
  0xba   : > { %1478 = vmatprep.subr.bf16.mxu0 %v1831_v3  ;;  %1498 = vmatprep.subr.bf16.mxu1 %v1831_v3 }
  0xbd   : > { %1479 = vmatpush3.bf16.msra.mxu0 %v1653_v36  ;;  %1499 = vmatpush3.bf16.msra.mxu1 %v1654_v37 }
  0xbe   : > { %1480 = vmatprep.subr.bf16.mxu0 %v1831_v3  ;;  %1500 = vmatprep.subr.bf16.mxu1 %v1831_v3 }
  0xc1   : > { %1481 = vmatpush3.bf16.msra.mxu0 %v1655_v38  ;;  %1501 = vmatpush3.bf16.msra.mxu1 %v1656_v39 }
  0xc2   : > { %1482 = vmatprep.subr.bf16.mxu0 %v1831_v3  ;;  %1502 = vmatprep.subr.bf16.mxu1 %v1831_v3 }
  0xc5   : > { %1483 = vmatpush3.bf16.msra.mxu0 %v1657_v40  ;;  %1503 = vmatpush3.bf16.msra.mxu1 %v1658_v41 }
  0xc6   : > { %1508 = vmatprep.subr.bf16.mxu0 %v1831_v3 }
  0xc8   : > { %1485 = vmatmul.mubr.bf16.vlgmr.msra.gmra.mrb[4].mxu0 %v501_v25 }
  0xc9   : > { %1524 = vmatprep.mubr.msk.bf16.mxu0 %vm1832_vm0, %v1831_v3  ;;  %1509 = vmatpush3.bf16.msra.mxu0 %v1659_v42 }
  0xca   : > { %1510 = vmatprep.subr.bf16.mxu0 %v1831_v3 }
  0xcd   : > { %1511 = vmatpush3.bf16.msra.mxu0 %v1660_v43 }
  0xce   : > { %1512 = vmatprep.subr.bf16.mxu0 %v1831_v3 }
  0xd1   : > { %1513 = vmatpush3.bf16.msra.mxu0 %v1661_v44 }
  0xd2   : > { %1514 = vmatprep.subr.bf16.mxu0 %v1831_v3 }
  0xd5   : > { %1515 = vmatpush3.bf16.msra.mxu0 %v1662_v45 }
  0xd6   : > { %1516 = vmatprep.subr.bf16.mxu0 %v1831_v3 }
  0xd9   : > { %1517 = vmatpush3.bf16.msra.mxu0 %v1663_v46 }
  0xda   : > { %1518 = vmatprep.subr.bf16.mxu0 %v1831_v3 }
  0xdd   : > { %1519 = vmatpush3.bf16.msra.mxu0 %v1664_v4 }
  0xde   : > { %1520 = vmatprep.subr.bf16.mxu0 %v1831_v3 }
  0xe1   : > { %1521 = vmatpush3.bf16.msra.mxu0 %v1665_v5 }
  0xe2   : > { %1522 = vmatprep.subr.bf16.mxu0 %v1831_v3 }
  0xe5   : > { %1523 = vmatpush3.bf16.msra.mxu0 %v1666_v6 }
 0x17b   : > { %v616_v47 = vpop.f32.mrb[0].mxu0  ;;  %v705_v48 = vpop.f32.mrb[0].mxu1 }
 0x17c   : > { %v1446_v50 = vpop.f32.mrb[1].mxu0  ;;  %v706_v51 = vadd.f32 %v705_v48, %v616_v47  ;;  %v1466_v52 = vpop.f32.mrb[1].mxu1 }
 0x17d   : > { %v619_v53 = vpop.f32.mrb[2].mxu0  ;;  %v708_v54 = vpop.f32.mrb[2].mxu1 }
 0x17e   : > { %v1447_v55 = vpop.f32.mrb[3].mxu0  ;;  %v719_v56 = vadd.f32 %v1296_v49, %v706_v51  ;;  %v709_v57 = vadd.f32 %v708_v54, %v619_v53  ;;  %v1467_v58 = vpop.f32.mrb[3].mxu1 }
 0x180   : > { %v720_v59 = vadd.f32 %v1296_v49, %v709_v57  ;;  %v721_v60 = vmax.f32 %v719_v56, 0.0 }
 0x182   : > { %v722_v61 = vmax.f32 %v720_v59, 0.0 }
 0x184   : > { %v723_v62 = vpack.c.bf16 %v722_v61, %v721_v60 }
 0x186   : > { %1505 = vmatmul.mubr.bf16.vlgmr.msra.gmra.mrb[4].mxu1 %v723_v62 }
 0x19b   : > { %v840_v63 = vpop.f32.mrb[4].mxu0 }
 0x19c   : > { %v1486_v0 = vpop.f32.mrb[5].mxu0 }
 0x19d   : > { %v843_v1 = vpop.f32.mrb[6].mxu0 }
 0x19e   : > { %v1487_v2 = vpop.f32.mrb[7].mxu0 }
 0x259   : > { %v929_v7 = vpop.f32.mrb[4].mxu1 }
 0x25a   : > { %v930_v9 = vadd.f32 %v929_v7, %v840_v63  ;;  %v1506_v10 = vpop.f32.mrb[5].mxu1 }
 0x25b   : > { %v932_v11 = vpop.f32.mrb[6].mxu1 }
 0x25c   : > { %v944_v12 = vadd.f32 %v1346_v8, %v930_v9  ;;  %v933_v13 = vadd.f32 %v932_v11, %v843_v1  ;;  %v1507_v14 = vpop.f32.mrb[7].mxu1 }
 0x25e   : > { %v946_v15 = vadd.f32 %v944_v12, %v2138_v22  ;;  %v945_v16 = vadd.f32 %v1346_v8, %v933_v13 }
 0x260   : > { %v947_v17 = vadd.f32 %v945_v16, %v2143_v23  ;;  %v948_v18 = vmax.f32 %v946_v15, 0.0 }
 0x262   : > { %v949_v3 = vmax.f32 %v947_v17, 0.0 }
 0x264   : > { %v950_v19 = vpack.c.bf16 %v949_v3, %v948_v18 }
 0x266   : > { %1525 = vmatmul.mubr.bf16.vlgmr.msra.gmra.mrb[8].mxu0 %v950_v19 }
 0x339   : > { %v1058_v21 = vpop.f32.mrb[8].mxu0 }
 0x33a   : > { %v1059_v24 = vadd.f32 %v1364_v20, %v1058_v21  ;;  %v1526_v22 = vpop.f32.mrb[9].mxu0 }
 0x33b   : > { %v1061_v25 = vpop.f32.mrb[10].mxu0 }
 0x33c   : > { %1065 = vst [vmem:[%s491_s12] sm:$0xff] %v1059_v24  ;;  %v1062_v23 = vadd.f32 %v1364_v20, %v1061_v25  ;;  %v1527_v26 = vpop.f32.mrb[11].mxu0 }
 0x33e   : > { %1066 = vst [vmem:[%s491_s12 + $0x8] sm:$0xff] %v1062_v23 }
 0x33f   : > { %1736 = shalt.err (!%p1733_p9)
}
 0x340   : > { %s1737_s16 = scalar_lea.hbm %s2217_s0, 256  ;;  %s1741_s15 = scalar_lea.hbm %s2271_s5, 512 }
 0x341   : > { %p1738_p11 = scmp.ne.s32.totalorder %s2217_s0, %s1737_s16  ;;  %p1742_p12 = scmp.lt.u32.totalorder %s2217_s0, %s2271_s5 }
 0x342   : > { %p1743_p4 = scmp.lt.u32.totalorder %s1741_s15, %s1737_s16  ;;  %p1745_p8 = scmp.lt.u32.totalorder %s1737_s16, %s2217_s0 }
 0x343   : > { %p1739_p1 = pnand %p1738_p11, %p2287_p7 }
 0x344   : > { %p1744_p6 = por %p1743_p4, %p1742_p12 }
 0x345   : > { %p1740_p5 = pneg %p1739_p1 }
 0x346   : > { %p1746_p10 = por %p1745_p8, %p1744_p6 }
 0x348   : > { %p1747_p13 = pnand %p1746_p10, %p1740_p5 }
 0x34a   : > { %1750 = shalt.err (!%p1747_p13)
}
 0x34b   : > { %s1834_s24 = smov 128   ;;  %s1835_s30 = smov 8  }
 0x34c   : > { %1554 = dma.vmem_to_hbm [thread:$0]  (%p2287_p7), %s2212_s11, 256, %s2217_s0, %s1068_s9, %s1834_s24, %s1834_s24, %s1835_s30  }
 0x34d PF: > { %s1098_s12 = sand.u32 1, %s1793_s18   ;;  %p2288_p0 = scmp.ne.s32.totalorder %s2284_s8, 0 }
 0x34e   : > { %p2289_p2 = scmp.ge.s32.totalorder %s1813_s23, 2  ;;  %s1099_s25 = scalar_lea.sflag [#allocation4], %s1098_s12 }
 0x350   : > { %p1557_p3 = pnand %p2289_p2, %p2288_p0 }
 0x352   : > { %1788 = dma.done.wait (!%p1557_p3), %s1099_s25, 256  }
 0x353   : > { %1790 = vsyncadd (!%p1557_p3), %s1099_s25, 4294967040  ;;  %s27_s23 = sadd.s32 1, %s1813_s23   ;;  %s2290_s7 = sld [smem:[#allocation22_spill]] }
 0x354   : > { %p24_p9 = scmp.ge.s32.totalorder %s27_s23, 4   ;;  %s2291_s20 = sld [smem:[#allocation24_spill]] }
 0x355   : > { %s2292_s6 = sld [smem:[#allocation23_spill]]  ;;  %s2293_s18 = smov %s1797_s19 }
 0x356   : > { %s2295_s21 = smov %s1809_s22  ;;  %26 = sbr.rel (!%p24_p9) target bundleno = 12 (0xc), region = 179 }
 0x359   : > { %s2294_s19 = smov %s2290_s7 }
 0x35b   : > { %s2296_s22 = smov %s2292_s6 }
 0x35d   :  { %1104 = vsyncpa [#allocation3], 1 }
 0x35e   :  { %1106 = vsyncpa [#allocation3 + $0x1], 1 }
 0x35f   :  { %1107 = vsyncpa [#allocation6], 1 }
 0x360   :  { %1109 = vsyncpa [#allocation6 + $0x1], 1 }
 0x361   :  { %1110 = vsyncpa [#allocation9], 1 }
 0x362   :  { %1112 = vsyncpa [#allocation9 + $0x1], 1 }
 0x363   :  { %1113 = vsyncpa [#allocation4], 1 }
 0x364   :  { %1115 = vsyncpa [#allocation4 + $0x1], 1 }

</bundles_post_ra>
